<compile_context>
chip_gen: v7x
topology: tpu7x:2x2x1
jax: 0.10.0
libtpu: 0.0.40
codegen_flags: <defaults>
</compile_context>

<pallas_src>
import jax
import jax.numpy as jnp
from jax.experimental import pallas as pl
from jax.experimental.pallas import tpu as pltpu


def _round_up(x, m):
    return (x + m - 1) // m * m


def _ppd_kernel(logits_ref, target_ref, partial_ref):
    """Per-tile partial sums of (1 - gathered_logit)^2, reduced along rows.

    logits_ref : (tile_rows, C) block of logits (f32 or bf16, native dtype)
    target_ref : (tile_rows, 1) int32 gather indices (sentinel C for padding)
    partial_ref: (1, 1, C) f32 lane-dense partial sums for this grid step
    """
    logits = logits_ref[...]                                   # (tr, C)
    tgt = target_ref[...]                                      # (tr, 1) int32

    # One-hot "gather": exactly one column per valid row matches the target.
    # Padded rows carry the sentinel C (out of range) -> all-false -> 0.
    cols = jax.lax.broadcasted_iota(jnp.int32, (1, logits.shape[-1]), 1)
    hit = cols == tgt                                          # (tr, C) bool

    diff = 1.0 - logits                                        # stays bf16/f32
    sq = diff * diff
    contrib = jnp.where(hit, sq, jnp.zeros_like(sq))           # (tr, C)

    # Sublane-only reduction (accumulate in f32) -> lane-dense (1, C) partial.
    psum = jnp.sum(contrib, axis=0, keepdims=True, dtype=jnp.float32)
    partial_ref[...] = psum[None]                              # (1, 1, C)


def _vmem_budget_bytes():
    """Generation-aware scoped-VMEM budget for this kernel."""
    cap = 64 * 1024 * 1024  # conservative default (v7x per-TC VMEM)
    try:
        info = pltpu.get_tpu_info()
        cap = int(getattr(info, "vmem_capacity_bytes", cap) or cap)
    except Exception:
        pass
    if cap <= 64 * 1024 * 1024:        # v7x: 64 MiB per TensorCore
        return 40 * 1024 * 1024
    return 64 * 1024 * 1024            # v5e / v6e: 128 MiB physical


def ppd_loss(contrast_logits, contrast_target, *, tile_rows=None):
    """PPD loss: mean((1 - gather(logits, target, axis=-1))^2)."""
    C = contrast_logits.shape[-1]
    logits2d = jnp.reshape(contrast_logits, (-1, C))
    if not jnp.issubdtype(logits2d.dtype, jnp.floating):
        logits2d = logits2d.astype(jnp.float32)
    N = logits2d.shape[0]
    target_flat = jnp.reshape(contrast_target, (-1, 1)).astype(jnp.int32)

    itemsize = jnp.dtype(logits2d.dtype).itemsize
    sublane = 16 if itemsize == 2 else 8   # bf16 packs 2 rows per sublane

    # Guarantee at least one sublane-aligned block of rows exists.
    if N < sublane:
        logits2d = jnp.pad(logits2d, ((0, sublane - N), (0, 0)))
    padded_n = max(N, sublane)

    # ---- Tile sizing from the VMEM budget -------------------------------
    scoped_budget = _vmem_budget_bytes()
    headroom = 2 * 1024 * 1024
    # Per pipeline stage: logits tile (tile_rows*C*itemsize) + the LANE-PADDED
    # (tile_rows, 1) int32 target tile (tile_rows*128*4 bytes of VMEM),
    # double-buffered by the pipeline.
    bytes_per_row = C * itemsize + 128 * 4
    if tile_rows is None:
        tile_rows = (scoped_budget - headroom) // (2 * bytes_per_row)
    tile_rows = int(tile_rows)

    # Keep >= 2 grid steps when the data allows it (pipeline overlap + v7x
    # megacore), cap at the array extent, and stay sublane-aligned.
    min_grid = 2 if padded_n >= 2 * sublane else 1
    max_tile = _round_up(pl.cdiv(padded_n, min_grid), sublane)
    tile_rows = max(sublane, min(_round_up(max(tile_rows, 1), sublane),
                                 max_tile, 65536))

    grid_n = pl.cdiv(padded_n, tile_rows)
    if grid_n > 1:
        if grid_n % 2:                      # prefer an even grid for 2 TCs
            grid_n += 1
        tile_rows = max(sublane, _round_up(pl.cdiv(padded_n, grid_n), sublane))
        grid_n = pl.cdiv(padded_n, tile_rows)
    total_rows = grid_n * tile_rows

    # Pad the (tiny) target column to exactly grid_n*tile_rows rows with an
    # out-of-range sentinel so padded/garbage rows contribute 0 in-kernel.
    pad_rows = total_rows - N
    target2d = jnp.pad(target_flat, ((0, pad_rows), (0, 0)), constant_values=C)

    cost = pl.CostEstimate(
        flops=5 * N * C,
        transcendentals=0,
        bytes_accessed=N * C * itemsize + total_rows * 4 + grid_n * C * 4,
    )

    partials = pl.pallas_call(
        _ppd_kernel,
        out_shape=jax.ShapeDtypeStruct((grid_n, 1, C), jnp.float32),
        grid=(grid_n,),
        in_specs=[
            pl.BlockSpec((tile_rows, C), lambda i: (i, 0)),
            pl.BlockSpec((tile_rows, 1), lambda i: (i, 0)),
        ],
        out_specs=pl.BlockSpec((1, 1, C), lambda i: (i, 0, 0)),
        compiler_params=pltpu.CompilerParams(
            dimension_semantics=("parallel",),
            vmem_limit_bytes=scoped_budget,
        ),
        cost_estimate=cost,
    )(logits2d, target2d)

    # Tiny final cross-lane / cross-block reduction + mean in plain JAX.
    return jnp.sum(partials) / jnp.float32(N)


def ppd_loss_ref(contrast_logits, contrast_target):
    C = contrast_logits.shape[-1]
    logits2d = jnp.reshape(contrast_logits, (-1, C)).astype(jnp.float32)
    tgt = jnp.reshape(contrast_target, (-1,)).astype(jnp.int32)
    gathered = jnp.take_along_axis(logits2d, tgt[:, None], axis=1)
    return jnp.mean((1.0 - gathered) ** 2)


if __name__ == "__main__":
    key = jax.random.PRNGKey(0)
    k1, k2, k3, k4, k5, k6 = jax.random.split(key, 6)

    # Case 1: batch=2, seq=64 pixels, C=128 classes*prototypes -> N=128 rows.
    B, S, C = 2, 64, 128
    logits1 = jax.random.normal(k1, (B, S, C), dtype=jnp.float32)
    target1 = jax.random.randint(k2, (B * S,), 0, C, dtype=jnp.int32)
    loss1 = jax.block_until_ready(ppd_loss(logits1, target1))
    ref1 = ppd_loss_ref(logits1, target1)
    assert jnp.allclose(loss1, ref1, atol=1e-5, rtol=1e-5), (loss1, ref1)

    # Case 2: ragged row count (N=100) and C not a multiple of 128 to exercise
    # the sentinel-padded tail path.
    B2, S2, C2 = 2, 50, 96
    logits2 = jax.random.normal(k3, (B2, S2, C2), dtype=jnp.float32)
    target2 = jax.random.randint(k4, (B2 * S2,), 0, C2, dtype=jnp.int32)
    loss2 = jax.block_until_ready(ppd_loss(logits2, target2))
    ref2 = ppd_loss_ref(logits2, target2)
    assert jnp.allclose(loss2, ref2, atol=1e-5, rtol=1e-5), (loss2, ref2)

    # Case 3: bf16 inputs (in-register bf16 compute path, f32 accumulation).
    B3, S3, C3 = 2, 48, 64
    logits3 = jax.random.normal(k5, (B3, S3, C3), dtype=jnp.bfloat16)
    target3 = jax.random.randint(k6, (B3 * S3,), 0, C3, dtype=jnp.int32)
    loss3 = jax.block_until_ready(ppd_loss(logits3, target3))
    ref3 = ppd_loss_ref(logits3, target3)
    assert jnp.allclose(loss3, ref3, atol=2e-2, rtol=2e-2), (loss3, ref3)

    print("KERNEL_OK")
</pallas_src>

<mosaic_0001>
module attributes {stable_mosaic.version = 11 : i64} {
  func.func @_ppd_kernel(%arg0: i32, %arg1: memref<64x128xf32, #tpu.memory_space<vmem>>, %arg2: memref<64x1xi32, #tpu.memory_space<vmem>>, %arg3: memref<1x1x128xf32, #tpu.memory_space<vmem>>) attributes {dimension_semantics = [#tpu.dimension_semantics<parallel>], iteration_bounds = array<i64: 2>, scalar_prefetch = 0 : i64, scratch_operands = 0 : i64, tpu.core_type = #tpu.core_type<tc>, window_params = [{transform_indices = @transform_0, window_bounds = array<i64: 64, 128>}, {transform_indices = @transform_1, window_bounds = array<i64: 64, 1>}, {transform_indices = @transform_2, window_bounds = array<i64: 1, 1, 128>}]} {
    %c0 = arith.constant 0 : index
    %c0_0 = arith.constant 0 : index
    %0 = vector.load %arg1[%c0, %c0_0] : memref<64x128xf32, #tpu.memory_space<vmem>>, vector<64x128xf32>
    %c0_1 = arith.constant 0 : index
    %c0_2 = arith.constant 0 : index
    %1 = vector.load %arg2[%c0_1, %c0_2] : memref<64x1xi32, #tpu.memory_space<vmem>>, vector<64x1xi32>
    %2 = tpu.iota {dimensions = array<i32: 1>} : vector<1x128xi32>
    %3 = vector.broadcast %2 : vector<1x128xi32> to vector<64x128xi32>
    %4 = vector.broadcast %1 : vector<64x1xi32> to vector<64x128xi32>
    %5 = arith.cmpi eq, %3, %4 : vector<64x128xi32>
    %cst = arith.constant 1.000000e+00 : f32
    %6 = vector.broadcast %cst : f32 to vector<64x128xf32>
    %7 = arith.subf %6, %0 : vector<64x128xf32>
    %8 = arith.mulf %7, %7 : vector<64x128xf32>
    %cst_3 = arith.constant 0.000000e+00 : f32
    %9 = vector.broadcast %cst_3 : f32 to vector<64x128xf32>
    %10 = arith.select %5, %8, %9 : vector<64x128xi1>, vector<64x128xf32>
    %cst_4 = arith.constant dense<0.000000e+00> : vector<128xf32>
    %11 = vector.multi_reduction <add>, %10, %cst_4 [0] : vector<64x128xf32> to vector<128xf32>
    %12 = vector.shape_cast %11 : vector<128xf32> to vector<1x128xf32>
    %13 = vector.shape_cast %12 : vector<1x128xf32> to vector<1x1x128xf32>
    %c0_5 = arith.constant 0 : index
    %c0_6 = arith.constant 0 : index
    %c0_7 = arith.constant 0 : index
    %14 = vector.load %arg3[%c0_5, %c0_6, %c0_7] : memref<1x1x128xf32, #tpu.memory_space<vmem>>, vector<1x1x128xf32>
    tpu.vector_store %arg3[%c0_5, %c0_6, %c0_7], %13 {strides = array<i32>} : memref<1x1x128xf32, #tpu.memory_space<vmem>>, vector<1x1x128xf32>,
    return
  }
  func.func @transform_0(%arg0: i32) -> (i32, i32) {
    %c0_i32 = arith.constant 0 : i32
    %c0_i32_0 = arith.constant 0 : i32
    return %arg0, %c0_i32 : i32, i32
  }
  func.func @transform_1(%arg0: i32) -> (i32, i32) {
    %c0_i32 = arith.constant 0 : i32
    %c0_i32_0 = arith.constant 0 : i32
    return %arg0, %c0_i32 : i32, i32
  }
  func.func @transform_2(%arg0: i32) -> (i32, i32, i32) {
    %c0_i32 = arith.constant 0 : i32
    %c0_i32_0 = arith.constant 0 : i32
    %c0_i32_1 = arith.constant 0 : i32
    return %arg0, %c0_i32, %c0_i32_0 : i32, i32, i32
  }
}

</mosaic_0001>

<bundles_post_ra>
// kernel: tpu_custom_call.1
= control target key start
LH: loop header
LB: loop body
LE: loop exit
PB: predicated region body
PF: predicated region fallthrough
CT: control target
= control target key end

     0   :  { %7 = vsyncpa [#allocation3], 0  ;;  %s579_s0 = inlined_call_operand.vmem [shape: f32[128,128], index: 0, kind: input, shape index: {}]   ;;  %s580_s1 = inlined_call_operand.vmem [shape: s32[128,1], index: 1, kind: input, shape index: {}]   ;;  %s581_s2 = inlined_call_operand.hbm [shape: f32[2,1,128], index: 2, kind: output, shape index: {}]  }
   0x1   :  { %9 = vsyncpa [#allocation3 + $0x1], 0  ;;  %s467_s9 = smov 0   ;;  %s469_s10 = smov 0  }
   0x2   :  { %s471_s11 = smov 0   ;;  %s473_s12 = smov 0  }
   0x3 LB: > { %s488_s13 = sadd.s32 4294967295, %s448_s12   ;;  %s333_s14 = sadd.s32 4294967294, %s448_s12   ;;  %s448_s12 = sphi %s473_s12, %s587_s12   ;;  %s444_s11 = sphi %s471_s11, %s586_s11   ;;  %s440_s10 = sphi %s469_s10, %s585_s10   ;;  %s436_s9 = sphi %s467_s9, %s584_s9  }
   0x4   : > { %s492_s15 = sadd.s32 1, %s448_s12   ;;  %s74_s16 = sadd.s32 1, %s444_s11 }
   0x5   : > { %s71_s17 = ssub.s32 %s448_s12, %s492_s15  ;;  %p84_p0 = scmp.ne.s32.totalorder %s444_s11, %s440_s10 }
   0x6   : > { %p72_p1 = scmp.eq.s32.totalorder %s71_s17, 0  ;;  %p85_p2 = scmp.eq.s32.totalorder %s488_s13, 1 }
   0x7   : > { %p90_p3 = scmp.ne.s32.totalorder %s440_s10, %s436_s9  ;;  %p91_p4 = scmp.eq.s32.totalorder %s333_s14, 1 }
   0x8   : > { %s503_s18 = scalar_select %p72_p1, %s444_s11, %s74_s16  }
   0x9   : > { %p505_p5 = por %p85_p2, %p84_p0  ;;  %p509_p6 = por %p91_p4, %p90_p3 }
   0xa   : > { %p336_p7 = scmp.ge.s32.totalorder %s448_s12, 1  ;;  %p127_p8 = scmp.lt.s32.totalorder %s448_s12, 3 }
   0xc   : > { %p128_p9 = pnand %p336_p7, %p127_p8 }
   0xd   : > { %s337_s21 = sshll.u32 (!%p128_p9), %s488_s13, 3  ;;  %v450_v0 = vmov (!%p128_p9), 0   ;;  %v181_v9 = vlaneseq (!%p128_p9)  ;;  %s151_s29 = sand.u32 (!%p128_p9), 1, %s440_s10  }
   0xe   : > { %131 = sbr.rel (%p128_p9) target bundleno = 199 (0xc7), region = 28  ;;  %385 = vset.pattern.permute.xlu1 (!%p128_p9), %v450_v0  ;;  %384 = vset.pattern.permute.xlu0 (!%p128_p9), %v450_v0  ;;  %p154_p10 = scmp.lt.s32.totalorder (!%p128_p9), %s337_s21, 15 }
   0xf   : > { %v182_v15 = vand.u32 (!%p128_p9), 127, %v181_v9  ;;  %s341_s30 = sshll.u32 (!%p128_p9), %s488_s13, 4  ;;  %s152_s3 = scalar_lea.vmem (!%p128_p9), [#allocation2], %s151_s29 }
  0x10   : > { %s266_s4 = sshll.u32 (!%p128_p9), %s152_s3, 4  ;;  %s537_s7 = scalar_lea.hbm (!%p128_p9), %s581_s2, %s341_s30  ;;  %s539_s4 = int_to_ptr.vmem [resolvable:$true] %s266_s4 }
  0x11   : > { %s254_s8 = scalar_lea.sflag (!%p128_p9), [#allocation3], %s151_s29  ;;  %s386_s14 = scalar_lea.vmem (!%p128_p9), %s539_s4, 16 }
  0x12   : > { %p387_p11 = scmp.ne.s32.totalorder (!%p128_p9), %s539_s4, %s386_s14  ;;  %s451_s13 = smov (!%p128_p9), [#allocation2]  }
  0x13   : > { %s390_s16 = sshll.u32 (!%p128_p9), %s451_s13, 4  ;;  %s391_s16 = int_to_ptr.vmem [resolvable:$false] %s390_s16 }
  0x14   : > { %p388_p12 = pnand (!%p128_p9), %p387_p11, %p505_p5  ;;  %s392_s17 = scalar_lea.vmem (!%p128_p9), %s391_s16, 32 }
  0x15   : > { %s589_s21 = smov (!%p154_p10, %s337_s21), 15  ;;  %p393_p0 = scmp.lt.s32.totalorder %s539_s4, %s391_s16 }
  0x16   : > { %s338_s22 = sshll.u32 %s589_s21, 3  ;;  %p389_p13 = pneg %p388_p12 }
  0x17   : > { %s163_s25 = scalar_lea.vmem %s580_s1, %s338_s22  ;;  %s522_s28 = scalar_lea.vmem %s579_s0, %s338_s22 }
  0x18   : > { %v175_v1 = vld [vmem:[%s163_s25 + $0x10] sm:$0xff]  ;;  %v173_v2 = vld [vmem:[%s163_s25] sm:$0xff]  ;;  %v176_v3 = vld [vmem:[%s163_s25 + $0x18] sm:$0xff]  ;;  %p394_p1 = scmp.lt.s32.totalorder %s392_s17, %s386_s14 }
  0x19   : > { %190 = vperm.xlu1 %385, %v175_v1   ;;  %184 = vperm.xlu0 %384, %v173_v2   ;;  %v174_v4 = vld [vmem:[%s163_s25 + $0x8] sm:$0xff]  ;;  %v177_v6 = vld [vmem:[%s163_s25 + $0x20] sm:$0xff]  ;;  %v180_v7 = vld [vmem:[%s163_s25 + $0x38] sm:$0xff] }
  0x1a   : > { %v178_v5 = vld [vmem:[%s163_s25 + $0x28] sm:$0xff]  ;;  %v179_v8 = vld [vmem:[%s163_s25 + $0x30] sm:$0xff]  ;;  %v165_v10 = vld [vmem:[%s522_s28] sm:$0xff]  ;;  %p395_p2 = por %p394_p1, %p393_p0 }
  0x1b   : > { %v166_v11 = vld [vmem:[%s522_s28 + $0x8] sm:$0xff]  ;;  %v167_v12 = vld [vmem:[%s522_s28 + $0x10] sm:$0xff]  ;;  %v215_v13 = vsub.f32 1.0, %v165_v10  ;;  %v168_v16 = vld [vmem:[%s522_s28 + $0x18] sm:$0xff] }
  0x1c   : > { %v216_v14 = vsub.f32 1.0, %v166_v11  ;;  %v217_v18 = vsub.f32 1.0, %v167_v12  ;;  %v169_v20 = vld [vmem:[%s522_s28 + $0x20] sm:$0xff]  ;;  %v218_v22 = vsub.f32 1.0, %v168_v16  ;;  %v170_v24 = vld [vmem:[%s522_s28 + $0x28] sm:$0xff]  ;;  %v171_v29 = vld [vmem:[%s522_s28 + $0x30] sm:$0xff]  ;;  %p396_p3 = pnand %p395_p2, %p389_p13 }
  0x1d   : > { %193 = vperm.xlu1 %385, %v176_v3   ;;  %187 = vperm.xlu0 %384, %v174_v4   ;;  %v223_v21 = vmul.f32 %v215_v13, %v215_v13  ;;  %v219_v28 = vsub.f32 1.0, %v169_v20  ;;  %v220_v33 = vsub.f32 1.0, %v170_v24  ;;  %v172_v35 = vld [vmem:[%s522_s28 + $0x38] sm:$0xff]  ;;  %v221_v40 = vsub.f32 1.0, %v171_v29 }
  0x1e   : > { %v224_v23 = vmul.f32 %v216_v14, %v216_v14  ;;  %v225_v25 = vmul.f32 %v217_v18, %v217_v18  ;;  %v226_v31 = vmul.f32 %v218_v22, %v218_v22  ;;  %v222_v44 = vsub.f32 1.0, %v172_v35 }
  0x1f   : > { %v227_v39 = vmul.f32 %v219_v28, %v219_v28  ;;  %v228_v43 = vmul.f32 %v220_v33, %v220_v33  ;;  %v229_v49 = vmul.f32 %v221_v40, %v221_v40 }
  0x20   : > { %v230_v52 = vmul.f32 %v222_v44, %v222_v44 }
  0x21   : > { %199 = vperm.xlu1 %385, %v178_v5   ;;  %196 = vperm.xlu0 %384, %v177_v6  }
  0x25   : > { %205 = vperm.xlu1 %385, %v180_v7   ;;  %202 = vperm.xlu0 %384, %v179_v8  }
  0x98   : > { %v191_v17 = vpop.permute.xlu1 %190  ;;  %v185_v19 = vpop.permute.xlu0 %184 }
  0x99   : > { %vm207_vm0 = vcmp.eq.s32.totalorder %v182_v15, %v185_v19  ;;  %vm209_vm1 = vcmp.eq.s32.totalorder %v182_v15, %v191_v17 }
  0x9a   : > { %v231_v30 = vsel %vm207_vm0, %v223_v21, 0.0  ;;  %v233_v36 = vsel %vm209_vm1, %v225_v25, 0.0 }
  0x9c   : > { %v194_v26 = vpop.permute.xlu1 %193  ;;  %v188_v27 = vpop.permute.xlu0 %187 }
  0x9d   : > { %vm208_vm2 = vcmp.eq.s32.totalorder %v182_v15, %v188_v27  ;;  %vm210_vm3 = vcmp.eq.s32.totalorder %v182_v15, %v194_v26 }
  0x9e   : > { %v232_v32 = vsel %vm208_vm2, %v224_v23, 0.0  ;;  %v234_v42 = vsel %vm210_vm3, %v226_v31, 0.0 }
  0x9f   : > { %v239_v34 = vadd.f32 %v232_v32, %v231_v30 }
  0xa0   : > { %v200_v37 = vpop.permute.xlu1 %199  ;;  %v197_v38 = vpop.permute.xlu0 %196 }
  0xa1   : > { %v240_v41 = vadd.f32 %v239_v34, %v233_v36  ;;  %vm211_vm4 = vcmp.eq.s32.totalorder %v182_v15, %v197_v38  ;;  %vm212_vm5 = vcmp.eq.s32.totalorder %v182_v15, %v200_v37 }
  0xa2   : > { %v235_v46 = vsel %vm211_vm4, %v227_v39, 0.0  ;;  %v236_v51 = vsel %vm212_vm5, %v228_v43, 0.0 }
  0xa3   : > { %v241_v45 = vadd.f32 %v240_v41, %v234_v42 }
  0xa4   : > { %v206_v47 = vpop.permute.xlu1 %205  ;;  %v203_v48 = vpop.permute.xlu0 %202 }
  0xa5   : > { %v242_v50 = vadd.f32 %v241_v45, %v235_v46  ;;  %vm213_vm6 = vcmp.eq.s32.totalorder %v182_v15, %v203_v48  ;;  %vm214_vm7 = vcmp.eq.s32.totalorder %v182_v15, %v206_v47 }
  0xa6   : > { %v237_v54 = vsel %vm213_vm6, %v229_v49, 0.0  ;;  %v238_v56 = vsel %vm214_vm7, %v230_v52, 0.0 }
  0xa7   : > { %v243_v53 = vadd.f32 %v242_v50, %v236_v51 }
  0xa9   : > { %v244_v55 = vadd.f32 %v243_v53, %v237_v54 }
  0xab   : > { %v245_v57 = vadd.f32 %v244_v55, %v238_v56 }
  0xad   : > { %v246_v58 = vrot.slane %v245_v57, 4 }
  0xaf   : > { %v247_v59 = vadd.f32 %v246_v58, %v245_v57 }
  0xb1   : > { %v248_v60 = vrot.slane %v247_v59, 2 }
  0xb3   : > { %v249_v61 = vadd.f32 %v248_v60, %v247_v59 }
  0xb5   : > { %v250_v62 = vrot.slane %v249_v61, 1 }
  0xb7   : > { %v251_v63 = vadd.f32 %v250_v62, %v249_v61 }
  0xb9   : > { %252 = vst [vmem:[%s152_s3] sm:$0x1] %v251_v63 }
  0xba   : > { %399 = shalt.err (!%p396_p3)
}
  0xbb   : > { %s400_s21 = scalar_lea.hbm %s537_s7, 16  ;;  %s404_s24 = scalar_lea.hbm %s581_s2, 32 }
  0xbc   : > { %p401_p4 = scmp.ne.s32.totalorder %s537_s7, %s400_s21  ;;  %p405_p9 = scmp.lt.u32.totalorder %s537_s7, %s581_s2 }
  0xbd   : > { %p406_p10 = scmp.lt.u32.totalorder %s404_s24, %s400_s21  ;;  %p408_p12 = scmp.lt.u32.totalorder %s400_s21, %s537_s7 }
  0xbe   : > { %p402_p7 = pnand %p401_p4, %p505_p5 }
  0xbf   : > { %p407_p11 = por %p406_p10, %p405_p9 }
  0xc0   : > { %p403_p8 = pneg %p402_p7 }
  0xc1   : > { %p409_p13 = por %p408_p12, %p407_p11 }
  0xc3   : > { %p410_p0 = pnand %p409_p13, %p403_p8 }
  0xc5   : > { %413 = shalt.err (!%p410_p0)
}
  0xc6   : > { %344 = dma.vmem_to_hbm [thread:$0]  (%p505_p5), %s539_s4, 16, %s537_s7, %s254_s8  }
  0xc7 PF: > { %p350_p1 = scmp.ge.s32.totalorder %s448_s12, 2  ;;  %s278_s27 = sand.u32 1, %s436_s9  }
  0xc8   : > { %s279_s28 = scalar_lea.sflag [#allocation3], %s278_s27 }
  0xc9   : > { %p347_p2 = pnand %p350_p1, %p509_p6 }
  0xcb   : > { %431 = dma.done.wait (!%p347_p2), %s279_s28, 16  }
  0xcc   : > { %433 = vsyncadd (!%p347_p2), %s279_s28, 4294967280  ;;  %p12_p3 = scmp.ge.s32.totalorder %s492_s15, 4   ;;  %s584_s9 = smov %s440_s10 }
  0xcd   : > { %s585_s10 = smov %s444_s11  ;;  %s586_s11 = smov %s503_s18 }
  0xce   : > { %s587_s12 = smov %s492_s15  ;;  %14 = sbr.rel (!%p12_p3) target bundleno = 3 (0x3), region = 66 }
  0xd5   :  { %283 = vsyncpa [#allocation3], 1 }
  0xd6   :  { %285 = vsyncpa [#allocation3 + $0x1], 1 }

</bundles_post_ra>
